<compile_context>
chip_gen: v6e
topology: v6e:2x2x1
jax: 0.10.0
libtpu: 0.0.40
codegen_flags: <defaults>
</compile_context>

<pallas_src>
import jax
import jax.numpy as jnp
from jax.experimental import pallas as pl
from jax.experimental.pallas import tpu as pltpu


def mlp_kernel(x_ref, params_ref, b2_ref, o_ref):
    # x_ref      : (1, NP)  batch on the 128-lane axis
    # params_ref : (H, 3)   columns = [hidden.weight, hidden.bias, predict.weight.T]
    # b2_ref     : (1, 1)   predict.bias scalar in SMEM
    # o_ref      : (1, NP)
    x = x_ref[...]                                  # (1, NP)
    p = params_ref[...]                             # (H, 3)
    w1 = p[:, 0:1]                                  # (H, 1)
    b1 = p[:, 1:2]                                  # (H, 1)
    w2 = p[:, 2:3]                                  # (H, 1)

    # Layer 1: relu(w1 * x + b1) -> (H, NP) broadcast multiply-add  [VPU]
    h = jnp.maximum(w1 * x + b1, 0.0)

    # Layer 2: out[n] = sum_j h[j, n] * w2[j]  ->  VPU mul + sublane reduce [XLU]
    o = jnp.sum(h * w2, axis=0, keepdims=True)      # (1, NP)

    o_ref[...] = (o + b2_ref[0, 0]).astype(o_ref.dtype)


def net_forward(x, w1, b1, w2, b2):
    """Forward pass of the PyTorch Net.

    x : (N, 1)          float32 (n_feature == 1, as in the original script)
    w1: (n_hidden, 1)   torch hidden.weight  (n_hidden, n_feature)
    b1: (n_hidden,)     torch hidden.bias
    w2: (1, n_hidden)   torch predict.weight (n_output, n_hidden)
    b2: (1,)            torch predict.bias
    returns (N, 1) float32
    """
    n, n_feature = x.shape
    assert n_feature == 1, "kernel is specialized for n_feature == 1"
    n_hidden = w1.shape[0]

    # Lane-dense re-layout: batch goes on the 128-lane axis, padded to 128*k.
    np_ = ((n + 127) // 128) * 128
    x_lane = jnp.pad(x[:, 0].astype(jnp.float32), (0, np_ - n))[None, :]  # (1, NP)

    # Pack the three per-hidden-unit parameter vectors into one VMEM tile.
    params = jnp.stack(
        [w1.reshape(n_hidden),          # hidden.weight  (n_feature == 1)
         b1.reshape(n_hidden),          # hidden.bias
         w2.reshape(n_hidden)],         # predict.weight.T
        axis=1,
    ).astype(jnp.float32)                                       # (H, 3)

    b2_s = b2.reshape(1, 1).astype(jnp.float32)                 # scalar -> SMEM

    vmem = pl.BlockSpec(memory_space=pltpu.MemorySpace.VMEM)
    smem = pl.BlockSpec(memory_space=pltpu.MemorySpace.SMEM)

    out_lane = pl.pallas_call(
        mlp_kernel,
        out_shape=jax.ShapeDtypeStruct((1, np_), jnp.float32),
        in_specs=[vmem, vmem, smem],
        out_specs=vmem,
    )(x_lane, params, b2_s)

    # Slice (not sum!) back to the real batch; padded lanes hold relu(b1).w2+b2.
    return out_lane[0, :n][:, None]


if __name__ == "__main__":
    # Shapes implied by the module's usage: x = linspace(-1, 1, 100)[:, None]
    N, N_FEATURE, N_HIDDEN, N_OUTPUT = 100, 1, 32, 1

    key = jax.random.PRNGKey(0)
    k1, k2, k3, k4 = jax.random.split(key, 4)

    # Deterministic init mimicking torch.nn.Linear's U(-1/sqrt(fan_in), ...),
    # stored in the *torch* layouts.
    bound1 = 1.0 / (N_FEATURE ** 0.5)
    bound2 = 1.0 / (N_HIDDEN ** 0.5)
    w1 = jax.random.uniform(k1, (N_HIDDEN, N_FEATURE), jnp.float32, -bound1, bound1)
    b1 = jax.random.uniform(k2, (N_HIDDEN,), jnp.float32, -bound1, bound1)
    w2 = jax.random.uniform(k3, (N_OUTPUT, N_HIDDEN), jnp.float32, -bound2, bound2)
    b2 = jax.random.uniform(k4, (N_OUTPUT,), jnp.float32, -bound2, bound2)

    # Input exactly as in the PyTorch script.
    x = jnp.linspace(-1.0, 1.0, N, dtype=jnp.float32)[:, None]   # (100, 1)

    out = net_forward(x, w1, b1, w2, b2)
    jax.block_until_ready(out)

    # Plain-JAX reference of the same forward pass (torch-layout weights).
    ref = jnp.maximum(x @ w1.T + b1[None, :], 0.0) @ w2.T + b2[None, :]
    assert out.shape == (N, N_OUTPUT)
    assert jnp.allclose(out, ref, atol=1e-5, rtol=1e-5)

    print("KERNEL_OK")
</pallas_src>

<mosaic_0001>
module attributes {stable_mosaic.version = 11 : i64} {
  func.func @mlp_kernel(%arg0: memref<1x128xf32, #tpu.memory_space<vmem>>, %arg1: memref<32x3xf32, #tpu.memory_space<vmem>>, %arg2: memref<1x1xf32, #tpu.memory_space<smem>>, %arg3: memref<1x128xf32, #tpu.memory_space<vmem>>) attributes {dimension_semantics = [], scalar_prefetch = 0 : i64, scratch_operands = 0 : i64, tpu.core_type = #tpu.core_type<tc>} {
    %c0 = arith.constant 0 : index
    %c0_0 = arith.constant 0 : index
    %0 = vector.load %arg0[%c0, %c0_0] : memref<1x128xf32, #tpu.memory_space<vmem>>, vector<1x128xf32>
    %c0_1 = arith.constant 0 : index
    %c0_2 = arith.constant 0 : index
    %1 = vector.load %arg1[%c0_1, %c0_2] : memref<32x3xf32, #tpu.memory_space<vmem>>, vector<32x3xf32>
    %2 = vector.extract_strided_slice %1 {offsets = [0, 0], sizes = [32, 1], strides = [1, 1]} : vector<32x3xf32> to vector<32x1xf32>
    %3 = vector.extract_strided_slice %1 {offsets = [0, 1], sizes = [32, 1], strides = [1, 1]} : vector<32x3xf32> to vector<32x1xf32>
    %4 = vector.extract_strided_slice %1 {offsets = [0, 2], sizes = [32, 1], strides = [1, 1]} : vector<32x3xf32> to vector<32x1xf32>
    %5 = vector.broadcast %2 : vector<32x1xf32> to vector<32x128xf32>
    %6 = vector.broadcast %0 : vector<1x128xf32> to vector<32x128xf32>
    %7 = arith.mulf %5, %6 : vector<32x128xf32>
    %8 = vector.broadcast %3 : vector<32x1xf32> to vector<32x128xf32>
    %9 = arith.addf %7, %8 : vector<32x128xf32>
    %cst = arith.constant 0.000000e+00 : f32
    %10 = vector.broadcast %cst : f32 to vector<32x128xf32>
    %11 = arith.maximumf %9, %10 : vector<32x128xf32>
    %12 = vector.broadcast %4 : vector<32x1xf32> to vector<32x128xf32>
    %13 = arith.mulf %11, %12 : vector<32x128xf32>
    %cst_3 = arith.constant dense<0.000000e+00> : vector<128xf32>
    %14 = vector.multi_reduction <add>, %13, %cst_3 [0] : vector<32x128xf32> to vector<128xf32>
    %15 = vector.shape_cast %14 : vector<128xf32> to vector<1x128xf32>
    %c0_4 = arith.constant 0 : index
    %c0_5 = arith.constant 0 : index
    %16 = memref.load %arg2[%c0_4, %c0_5] : memref<1x1xf32, #tpu.memory_space<smem>>
    %17 = vector.broadcast %16 : f32 to vector<1x128xf32>
    %18 = arith.addf %15, %17 : vector<1x128xf32>
    %c0_6 = arith.constant 0 : index
    %c0_7 = arith.constant 0 : index
    %19 = vector.load %arg3[%c0_6, %c0_7] : memref<1x128xf32, #tpu.memory_space<vmem>>, vector<1x128xf32>
    tpu.vector_store %arg3[%c0_6, %c0_7], %18 {strides = array<i32>} : memref<1x128xf32, #tpu.memory_space<vmem>>, vector<1x128xf32>,
    return
  }
}

</mosaic_0001>

<bundles_post_ra>
// kernel: tpu_custom_call.1
= control target key start
LH: loop header
LB: loop body
LE: loop exit
PB: predicated region body
PF: predicated region fallthrough
CT: control target
= control target key end

     0   :  { %v157_v2 = vmov 0   ;;  %s202_s0 = inlined_call_operand.vmem [shape: f32[1,128], index: 0, kind: input, shape index: {}]   ;;  %s203_s1 = inlined_call_operand.vmem [shape: f32[32,3], index: 1, kind: input, shape index: {}]   ;;  %s204_s2 = inlined_call_operand.<no memory space> [shape: f32[1,1], index: 2, kind: input, shape index: {}]   ;;  %s205_s3 = inlined_call_operand.hbm [shape: f32[1,128], index: 3, kind: output, shape index: {}]  }
   0x1   :  { %v19_v0 = vld [vmem:[%s203_s1 + $0x10] sm:$0xff]  ;;  %v17_v1 = vld [vmem:[%s203_s1] sm:$0xff]  ;;  %128 = vset.pattern.permute.xlu1 %v157_v2  ;;  %127 = vset.pattern.permute.xlu0 %v157_v2 }
   0x2   :  { %9 = vsyncpa [#allocation4], 0  ;;  %33 = vperm.xlu1 %128, %v19_v0   ;;  %23 = vperm.xlu0 %127, %v17_v1   ;;  %v18_v3 = vld [vmem:[%s203_s1 + $0x8] sm:$0xff]  ;;  %v158_v4 = vmov 1   ;;  %v20_v5 = vld [vmem:[%s203_s1 + $0x18] sm:$0xff]  ;;  %v159_v6 = vmov 2   ;;  %v105_v44 = vstv %s204_s2 }
   0x3   :  { %v122_v13 = vld [vmem:[%s202_s0] ss:$0 sm:$0xff]  ;;  %s160_s22 = smov [#allocation3]  }
   0x4   :  { %s114_s23 = sshll.u32 %s160_s22, 4  ;;  %s115_s23 = int_to_ptr.vmem [resolvable:$true] %s114_s23 }
   0x5   :  { %s135_s24 = scalar_lea.vmem %s115_s23, 16  ;;  %s139_s25 = scalar_lea.vmem %s115_s23, 32 }
   0x6   :  { %129 = vset.pattern.permute.xlu1 %v158_v4  ;;  %28 = vperm.xlu0 %127, %v18_v3   ;;  %p136_p0 = scmp.ne.s32.totalorder %s115_s23, %s135_s24  ;;  %p140_p1 = scmp.lt.s32.totalorder %s115_s23, %s115_s23 }
   0x7   :  { %52 = vperm.xlu1 %129, %v17_v1   ;;  %p141_p2 = scmp.lt.s32.totalorder %s139_s25, %s135_s24 }
   0x9   :  { %p142_p3 = por %p141_p2, %p140_p1 }
   0xa   :  { %130 = vset.pattern.permute.xlu0 %v158_v4 }
   0xb   :  { %131 = vset.pattern.permute.xlu1 %v157_v2  ;;  %56 = vperm.xlu0 %130, %v18_v3   ;;  %p143_p4 = pnand %p142_p3, %p136_p0 }
   0xc   :  { %38 = vperm.xlu1 %131, %v20_v5  }
   0xf   :  { %64 = vperm.xlu0 %130, %v20_v5  }
  0x10   :  { %132 = vset.pattern.permute.xlu1 %v158_v4 }
  0x11   :  { %60 = vperm.xlu1 %132, %v19_v0  }
  0x13   :  { %134 = vset.pattern.permute.xlu0 %v159_v6 }
  0x14   :  { %80 = vperm.xlu0 %134, %v18_v3  }
  0x15   :  { %133 = vset.pattern.permute.xlu1 %v159_v6 }
  0x16   :  { %76 = vperm.xlu1 %133, %v17_v1  }
  0x1a   :  { %84 = vperm.xlu1 %133, %v19_v0  }
  0x1e   :  { %88 = vperm.xlu1 %133, %v20_v5  }
  0x7d   :  { %v34_v7 = vpop.permute.xlu1 %33  ;;  %v24_v8 = vpop.permute.xlu0 %23 }
  0x7e   :  { %v47_v14 = vmul.f32 %v122_v13, %v24_v8  ;;  %v49_v18 = vmul.f32 %v122_v13, %v34_v7 }
  0x81   :  { %v29_v9 = vpop.permute.xlu0 %28 }
  0x82   :  { %v53_v10 = vpop.permute.xlu1 %52  ;;  %v48_v15 = vmul.f32 %v122_v13, %v29_v9 }
  0x83   :  { %v67_v19 = vadd.f32 %v53_v10, %v47_v14 }
  0x85   :  { %v71_v24 = vmax.f32 %v67_v19, 0.0 }
  0x86   :  { %v57_v11 = vpop.permute.xlu0 %56 }
  0x87   :  { %v39_v12 = vpop.permute.xlu1 %38  ;;  %v68_v20 = vadd.f32 %v57_v11, %v48_v15 }
  0x88   :  { %v50_v21 = vmul.f32 %v122_v13, %v39_v12 }
  0x89   :  { %v72_v26 = vmax.f32 %v68_v20, 0.0 }
  0x8a   :  { %v65_v17 = vpop.permute.xlu0 %64 }
  0x8b   :  { %v70_v27 = vadd.f32 %v65_v17, %v50_v21 }
  0x8c   :  { %v61_v16 = vpop.permute.xlu1 %60 }
  0x8d   :  { %v69_v22 = vadd.f32 %v61_v16, %v49_v18  ;;  %v74_v33 = vmax.f32 %v70_v27, 0.0 }
  0x8f   :  { %v81_v25 = vpop.permute.xlu0 %80  ;;  %v73_v28 = vmax.f32 %v69_v22, 0.0 }
  0x90   :  { %v92_v31 = vmul.f32 %v81_v25, %v72_v26 }
  0x91   :  { %v77_v23 = vpop.permute.xlu1 %76 }
  0x92   :  { %v91_v29 = vmul.f32 %v77_v23, %v71_v24 }
  0x94   :  { %v95_v34 = vadd.f32 %v92_v31, %v91_v29 }
  0x95   :  { %v85_v30 = vpop.permute.xlu1 %84 }
  0x96   :  { %v93_v32 = vmul.f32 %v85_v30, %v73_v28 }
  0x98   :  { %v96_v36 = vadd.f32 %v95_v34, %v93_v32 }
  0x99   :  { %v89_v35 = vpop.permute.xlu1 %88 }
  0x9a   :  { %v94_v37 = vmul.f32 %v89_v35, %v74_v33 }
  0x9c   :  { %v97_v38 = vadd.f32 %v96_v36, %v94_v37 }
  0x9e   :  { %v98_v39 = vrot.slane %v97_v38, 4 }
  0xa0   :  { %v99_v40 = vadd.f32 %v98_v39, %v97_v38 }
  0xa2   :  { %v100_v41 = vrot.slane %v99_v40, 2 }
  0xa4   :  { %v101_v42 = vadd.f32 %v100_v41, %v99_v40 }
  0xa6   :  { %v102_v43 = vrot.slane %v101_v42, 1 }
  0xa8   :  { %v103_v45 = vadd.f32 %v102_v43, %v101_v42 }
  0xaa   :  { %v106_v46 = vadd.f32 %v105_v44, %v103_v45 }
  0xac   :  { %107 = vst [vmem:[#allocation3] sm:$0x1] %v106_v46 }
  0xad   :  { %146 = shalt.err (!%p143_p4)
}
  0xae   :  { %117 = dma.vmem_to_hbm [thread:$0]  %s115_s23, 16, %s205_s3, [#allocation4]  }
  0xaf   :  { %155 = dma.done.wait [#allocation4], 16  }
  0xb0   :  { %156 = vsyncadd [#allocation4], 4294967280 }
  0xb1   :  { %121 = vsyncpa [#allocation4], 1 }

</bundles_post_ra>
